<compile_context>
chip_gen: v5e
topology: v5e:2x2
jax: 0.10.0
libtpu: 0.0.40
codegen_flags: <defaults>
</compile_context>

<pallas_src>
import math

import jax
import jax.numpy as jnp
from jax.experimental import pallas as pl
from jax.experimental.pallas import tpu as pltpu


def _rope_kernel(pos_ref, theta_ref, out_ref):
    # pos_ref:   (tile, 1)          VMEM  - positions, row dim on sublanes
    # theta_ref: (1, 2*d_model)     VMEM  - theta duplicated per (cos, sin) slot
    # out_ref:   (tile, 2*d_model)  VMEM
    pos = pos_ref[...]                      # (tile, 1)
    theta = theta_ref[...]                  # (1, 2*d_model)
    angles = pos * theta                    # broadcast multiply -> (tile, 2*d_model)

    cos_v = jnp.cos(angles)
    sin_v = jnp.sin(angles)

    # even lanes -> cos, odd lanes -> sin (lane-parity select on the VPU)
    lane = jax.lax.broadcasted_iota(jnp.int32, angles.shape, 1)
    out_ref[...] = jnp.where((lane & 1) == 1, sin_v, cos_v)


def _make_theta(d_model, base):
    # Mirrors the torch list-comprehension exactly (f64 pow rounded to f32).
    vals = [base ** (-2 * (i // 2) / d_model) for i in range(d_model)]
    return jnp.array(vals, dtype=jnp.float32)


def rope_positional_encoding(positions, d_model, base=10000.0, row_tile=1024):
    """positions: arbitrary-shaped float/int array -> (..., 2*d_model) float32."""
    positions = jnp.asarray(positions, jnp.float32)
    orig_shape = positions.shape
    total = max(1, math.prod(orig_shape)) if orig_shape else 1
    two_d = 2 * d_model

    # Row tile: multiple of 8 (sublane aligned), capped so one output block stays
    # around <= 2 MiB (double-buffered + inputs still tiny vs VMEM).
    cap = max(8, ((2 * 1024 * 1024) // (two_d * 4)) // 8 * 8)
    tile = min(row_tile, cap, ((total + 7) // 8) * 8)
    tile = max(8, (tile // 8) * 8)
    num_tiles = -(-total // tile)
    padded = num_tiles * tile

    pos_flat = positions.reshape(total, 1)
    if padded != total:
        pos_flat = jnp.pad(pos_flat, ((0, padded - total), (0, 0)))

    theta = _make_theta(d_model, base)
    theta_row = jnp.repeat(theta, 2).reshape(1, two_d)   # (1, 2*d_model)

    out = pl.pallas_call(
        _rope_kernel,
        out_shape=jax.ShapeDtypeStruct((padded, two_d), jnp.float32),
        grid=(num_tiles,),
        in_specs=[
            pl.BlockSpec((tile, 1), lambda r: (r, 0)),
            pl.BlockSpec((1, two_d), lambda r: (0, 0)),   # constant block: DMA'd once
        ],
        out_specs=pl.BlockSpec((tile, two_d), lambda r: (r, 0)),
        compiler_params=pltpu.CompilerParams(
            dimension_semantics=("parallel",),            # shard row tiles across TCs
        ),
    )(pos_flat, theta_row)

    return out[:total].reshape(*orig_shape, two_d)


def _reference(positions, d_model, base=10000.0):
    theta = _make_theta(d_model, base)
    angles = positions.astype(jnp.float32)[..., None] * theta        # (..., d_model)
    sin_cos = jnp.stack([jnp.cos(angles), jnp.sin(angles)], axis=-1)  # (..., d_model, 2)
    return sin_cos.reshape(*sin_cos.shape[:-2], -1)                   # (..., 2*d_model)


if __name__ == "__main__":
    key = jax.random.PRNGKey(0)
    B, S, d_model = 2, 16, 64  # output last dim = 128 (lane-dense)

    # deterministic "positions": integer-like positions as float32
    positions = jnp.floor(
        jax.random.uniform(key, (B, S), dtype=jnp.float32) * 1000.0
    )

    out = rope_positional_encoding(positions, d_model)
    out = jax.block_until_ready(out)

    ref = _reference(positions, d_model)
    assert out.shape == (B, S, 2 * d_model)
    assert jnp.allclose(out, ref, atol=1e-5, rtol=1e-5)

    print("KERNEL_OK")
</pallas_src>

<mosaic_0001>
module attributes {stable_mosaic.version = 11 : i64} {
  func.func @_rope_kernel(%arg0: i32, %arg1: memref<32x1xf32, #tpu.memory_space<vmem>>, %arg2: memref<1x128xf32, #tpu.memory_space<vmem>>, %arg3: memref<32x128xf32, #tpu.memory_space<vmem>>) attributes {dimension_semantics = [#tpu.dimension_semantics<parallel>], iteration_bounds = array<i64: 1>, scalar_prefetch = 0 : i64, scratch_operands = 0 : i64, tpu.core_type = #tpu.core_type<tc>, window_params = [{transform_indices = @transform_0, window_bounds = array<i64: 32, 1>}, {pipeline_mode = #tpu.pipeline_mode<synchronous>, transform_indices = @transform_1, window_bounds = array<i64: 1, 128>}, {transform_indices = @transform_2, window_bounds = array<i64: 32, 128>}]} {
    %c0 = arith.constant 0 : index
    %c0_0 = arith.constant 0 : index
    %0 = vector.load %arg1[%c0, %c0_0] : memref<32x1xf32, #tpu.memory_space<vmem>>, vector<32x1xf32>
    %c0_1 = arith.constant 0 : index
    %c0_2 = arith.constant 0 : index
    %1 = vector.load %arg2[%c0_1, %c0_2] : memref<1x128xf32, #tpu.memory_space<vmem>>, vector<1x128xf32>
    %2 = vector.broadcast %0 : vector<32x1xf32> to vector<32x128xf32>
    %3 = vector.broadcast %1 : vector<1x128xf32> to vector<32x128xf32>
    %4 = arith.mulf %2, %3 : vector<32x128xf32>
    %5 = math.cos %4 : vector<32x128xf32>
    %6 = math.sin %4 : vector<32x128xf32>
    %7 = tpu.iota {dimensions = array<i32: 1>} : vector<32x128xi32>
    %c1_i32 = arith.constant 1 : i32
    %8 = vector.broadcast %c1_i32 : i32 to vector<32x128xi32>
    %9 = arith.andi %7, %8 : vector<32x128xi32>
    %c1_i32_3 = arith.constant 1 : i32
    %10 = vector.broadcast %c1_i32_3 : i32 to vector<32x128xi32>
    %11 = arith.cmpi eq, %9, %10 : vector<32x128xi32>
    %12 = arith.select %11, %6, %5 : vector<32x128xi1>, vector<32x128xf32>
    %c0_4 = arith.constant 0 : index
    %c0_5 = arith.constant 0 : index
    %13 = vector.load %arg3[%c0_4, %c0_5] : memref<32x128xf32, #tpu.memory_space<vmem>>, vector<32x128xf32>
    tpu.vector_store %arg3[%c0_4, %c0_5], %12 {strides = array<i32>} : memref<32x128xf32, #tpu.memory_space<vmem>>, vector<32x128xf32>,
    return
  }
  func.func @transform_0(%arg0: i32) -> (i32, i32) {
    %c0_i32 = arith.constant 0 : i32
    %c0_i32_0 = arith.constant 0 : i32
    return %arg0, %c0_i32 : i32, i32
  }
  func.func @transform_1(%arg0: i32) -> (i32, i32) {
    %c0_i32 = arith.constant 0 : i32
    %c0_i32_0 = arith.constant 0 : i32
    %c0_i32_1 = arith.constant 0 : i32
    return %c0_i32, %c0_i32_0 : i32, i32
  }
  func.func @transform_2(%arg0: i32) -> (i32, i32) {
    %c0_i32 = arith.constant 0 : i32
    %c0_i32_0 = arith.constant 0 : i32
    return %arg0, %c0_i32 : i32, i32
  }
}

</mosaic_0001>

<bundles_post_ra>
// kernel: tpu_custom_call.1
= control target key start
LH: loop header
LB: loop body
LE: loop exit
PB: predicated region body
PF: predicated region fallthrough
CT: control target
= control target key end

     0   :  { %v1373_v2 = vmov 0   ;;  %s1869_s0 = inlined_call_operand.vmem [shape: f32[32,1], index: 0, kind: input, shape index: {}]   ;;  %s1870_s1 = inlined_call_operand.vmem [shape: f32[1,128], index: 1, kind: input, shape index: {}]   ;;  %s1871_s2 = inlined_call_operand.hbm [shape: f32[32,128], index: 2, kind: output, shape index: {}]  }
   0x1   :  { %v14_v0 = vld [vmem:[%s1869_s0 + $0x10] sm:$0xff]  ;;  %v12_v1 = vld [vmem:[%s1869_s0] sm:$0xff]  ;;  %1345 = vset.pattern.permute.xlu1 %v1373_v2  ;;  %1344 = vset.pattern.permute.xlu0 %v1373_v2 }
   0x2   :  { %29 = vperm.xlu1 %1345, %v14_v0   ;;  %19 = vperm.xlu0 %1344, %v12_v1  }
   0x3   :  { %7 = vsyncpa [#allocation3], 0  ;;  %v15_v3 = vld [vmem:[%s1869_s0 + $0x18] sm:$0xff]  ;;  %v13_v4 = vld [vmem:[%s1869_s0 + $0x8] sm:$0xff]  ;;  %v1374_v36 = vmov 683565275  }
   0x4   :  { %v1415_v5 = vld [vmem:[%s1870_s1] ss:$0 sm:$0xff]  ;;  %v1375_v38 = vmov 2475754826   ;;  %v1376_v42 = vmov 2131351028  }
   0x5   :  { %v1377_v45 = vmov 2102212464   ;;  %v1378_v48 = vmov 920167782   ;;  %v1379_v51 = vmov 1326507024  }
   0x6   :  { %s1380_s0 = smov [#allocation2]   ;;  %s1298_s21 = sshll.u32 %s1871_s2, 4  ;;  %s1299_s21 = int_to_ptr.hbm [resolvable:$true] %s1298_s21 }
   0x7   :  { %s1296_s1 = sshll.u32 %s1380_s0, 4  ;;  %s1381_s2 = smov 128   ;;  %s1297_s1 = int_to_ptr.vmem [resolvable:$true] %s1296_s1 }
   0x8   :  { %s1382_s22 = smov 8  }
   0xa   :  { %34 = vperm.xlu1 %1345, %v15_v3   ;;  %24 = vperm.xlu0 %1344, %v13_v4  }
  0x74   :  { %v30_v6 = vpop.permute.xlu1 %29  ;;  %v20_v7 = vpop.permute.xlu0 %19 }
  0x75   :  { %v1418_v8 = vmul.f32 %v1415_v5, %v30_v6  ;;  %v1421_v9 = vmul.f32 %v1415_v5, %v20_v7 }
  0x77   :  { %v352_v10 = vand.u32 2147483647, %v1418_v8  ;;  %v355_v11 = vand.u32 2139095040, %v1418_v8  ;;  %v44_v12 = vand.u32 2147483647, %v1421_v9  ;;  %v47_v13 = vand.u32 2139095040, %v1421_v9 }
  0x79   :  { %v356_v14 = vshrl.u32 %v355_v11, 23  ;;  %v359_v15 = vand.u32 8388607, %v352_v10  ;;  %v48_v16 = vshrl.u32 %v47_v13, 23  ;;  %v51_v17 = vand.u32 8388607, %v44_v12 }
  0x7b   :  { %v1316_v18 = vadd.s32 4294967169, %v356_v14  ;;  %v360_v19 = vor.u32 8388608, %v359_v15  ;;  %v1310_v20 = vadd.s32 4294967169, %v48_v16  ;;  %v52_v21 = vor.u32 8388608, %v51_v17 }
  0x7c   :  { %v35_v25 = vpop.permute.xlu1 %34 }
  0x7d   :  { %v362_v22 = vadd.s32 1, %v1316_v18  ;;  %v54_v23 = vadd.s32 1, %v1310_v20  ;;  %v1431_v24 = vshll.u32 %v360_v19, 8  ;;  %v1433_v27 = vshll.u32 %v52_v21, 8 }
  0x7e   :  { %v1436_v30 = vmul.f32 %v1415_v5, %v35_v25 }
  0x7f   :  { %vm363_vm0 = vcmp.gt.s32.totalorder %v362_v22, 0  ;;  %vm55_vm1 = vcmp.gt.s32.totalorder %v54_v23, 0  ;;  %v1439_v32 = vand.u32 65535, %v1431_v24  ;;  %v1442_v33 = vshrl.u32 %v1431_v24, 16 }
  0x80   :  { %v364_v26 = vsel %vm363_vm0, %v362_v22, 0  ;;  %v56_v29 = vsel %vm55_vm1, %v54_v23, 0  ;;  %v1451_v40 = vand.u32 65535, %v1433_v27 }
  0x81   :  { %v366_v28 = vand.u32 31, %v364_v26  ;;  %v1444_v34 = vand.u32 31, %v56_v29  ;;  %v1446_v35 = vshrl.u32 %v364_v26, 5  ;;  %v1493_v21 = vshrl.u32 %v56_v29, 5 }
  0x83   :  { %v367_v31 = vsub.s32 32, %v366_v28  ;;  %v369_v37 = vshll.u32 %v1374_v36, %v366_v28  ;;  %v372_v39 = vshll.u32 %v1375_v38, %v366_v28  ;;  %v375_v44 = vshll.u32 %v1376_v42, %v366_v28 }
  0x84   :  { %v378_v47 = vshll.u32 %v1377_v45, %v366_v28  ;;  %v381_v50 = vshll.u32 %v1378_v48, %v366_v28  ;;  %v1462_v56 = vsub.s32 32, %v1444_v34  ;;  %vm384_vm2 = vcmp.lt.s32.totalorder %v1446_v35, 1 }
  0x85   :  { %v370_v41 = vshrl.u32 %v1375_v38, %v367_v31  ;;  %v373_v43 = vshrl.u32 %v1376_v42, %v367_v31  ;;  %v376_v46 = vshrl.u32 %v1377_v45, %v367_v31  ;;  %v379_v49 = vshrl.u32 %v1378_v48, %v367_v31 }
  0x86   :  { %v382_v52 = vshrl.u32 %v1379_v51, %v367_v31  ;;  %vm385_vm3 = vcmp.lt.s32.totalorder %v1446_v35, 2  ;;  %v368_v59 = vshrl.u32 %v1374_v36, %v367_v31  ;;  %vm387_vm4 = vcmp.lt.s32.totalorder %v1446_v35, 4 }
  0x87   :  { %v371_v53 = vor.u32 %v370_v41, %v369_v37  ;;  %v374_v54 = vor.u32 %v373_v43, %v372_v39  ;;  %v377_v55 = vor.u32 %v376_v46, %v375_v44  ;;  %v380_v57 = vor.u32 %v379_v49, %v378_v47 }
  0x88   :  { %v383_v58 = vor.u32 %v382_v52, %v381_v50  ;;  %vm386_vm5 = vcmp.lt.s32.totalorder %v1446_v35, 3  ;;  %v61_v0 = vshll.u32 %v1374_v36, %v1444_v34  ;;  %v62_v6 = vshrl.u32 %v1375_v38, %v1462_v56 }
  0x89   :  { %v392_v60 = vsel %vm384_vm2, %v371_v53, %v374_v54  ;;  %v396_v61 = vsel %vm384_vm2, %v374_v54, %v377_v55  ;;  %v393_v62 = vsel %vm387_vm4, %v380_v57, 920167782  ;;  %v389_v1 = vsel %vm387_vm4, %v377_v55, 2102212464 }
  0x8a   :  { %v397_v63 = vsel %vm387_vm4, %v383_v58, 1326507024  ;;  %v394_v3 = vsel %vm386_vm5, %v377_v55, %v393_v62  ;;  %v64_v13 = vshll.u32 %v1375_v38, %v1444_v34  ;;  %v65_v14 = vshrl.u32 %v1376_v42, %v1462_v56 }
  0x8b   :  { %v398_v4 = vsel %vm386_vm5, %v380_v57, %v397_v63  ;;  %v395_v7 = vsel %vm385_vm3, %v392_v60, %v394_v3  ;;  %v388_v19 = vsel %vm384_vm2, %v368_v59, %v371_v53  ;;  %v390_v20 = vsel %vm386_vm5, %v374_v54, %v389_v1 }
  0x8c   :  { %v399_v11 = vsel %vm385_vm3, %v396_v61, %v398_v4  ;;  %v425_v17 = vand.u32 65535, %v395_v7  ;;  %v426_v18 = vshrl.u32 %v395_v7, 16  ;;  %v1495_v22 = vor.u32 %v62_v6, %v61_v0 }
  0x8d   :  { %v403_v15 = vand.u32 65535, %v399_v11  ;;  %v404_v16 = vshrl.u32 %v399_v11, 16  ;;  %v1499_v26 = vor.u32 %v65_v14, %v64_v13  ;;  %v68_v28 = vshrl.u32 %v1377_v45, %v1462_v56 }
  0x8e   :  { %v428_v37 = vmul.u32 %v426_v18, %v1439_v32  ;;  %v429_v39 = vmul.u32 %v425_v17, %v1442_v33  ;;  %v67_v29 = vshll.u32 %v1376_v42, %v1444_v34  ;;  %v427_v44 = vmul.u32 %v425_v17, %v1439_v32 }
  0x8f   :  { %v406_v23 = vmul.u32 %v404_v16, %v1439_v32  ;;  %v407_v25 = vmul.u32 %v403_v15, %v1442_v33  ;;  %v405_v31 = vmul.u32 %v403_v15, %v1439_v32  ;;  %v408_v41 = vmul.u32 %v404_v16, %v1442_v33 }
  0x90   :  { %v430_v46 = vmul.u32 %v426_v18, %v1442_v33  ;;  %v431_v52 = vshll.u32 %v428_v37, 16  ;;  %v433_v54 = vshll.u32 %v429_v39, 16  ;;  %v1511_v55 = vor.u32 %v68_v28, %v67_v29 }
  0x91   :  { %v409_v43 = vshll.u32 %v406_v23, 16  ;;  %v410_v47 = vshrl.u32 %v406_v23, 16  ;;  %v411_v49 = vshll.u32 %v407_v25, 16  ;;  %v412_v50 = vshrl.u32 %v407_v25, 16 }
  0x92   :  { %vm435_vm7 = vc.u32 %v427_v44, %v431_v52  ;;  %v437_v58 = vadd.s32 %v431_v52, %v427_v44  ;;  %v71_v59 = vshrl.u32 %v1378_v48, %v1462_v56  ;;  %v70_v33 = vshll.u32 %v1377_v45, %v1444_v34 }
  0x93   :  { %vm413_vm6 = vc.u32 %v405_v31, %v409_v43  ;;  %v415_v53 = vadd.s32 %v409_v43, %v405_v31  ;;  %v436_v32 = vsel %vm435_vm7, 1, %v1373_v2  ;;  %v73_v63 = vshll.u32 %v1378_v48, %v1444_v34 }
  0x94   :  { %v414_v57 = vsel %vm413_vm6, 1, %v1373_v2  ;;  %v438_v62 = vadd.s32 %v436_v32, %v430_v46  ;;  %vm439_vm9 = vc.u32 %v437_v58, %v433_v54  ;;  %v72_v3 = vor.u32 %v71_v59, %v70_v33 }
  0x95   :  { %v416_v60 = vadd.s32 %v414_v57, %v408_v41  ;;  %vm417_vm8 = vc.u32 %v415_v53, %v411_v49  ;;  %v440_v1 = vsel %vm439_vm9, 1, %v1373_v2  ;;  %v74_v4 = vshrl.u32 %v1379_v51, %v1462_v56 }
  0x96   :  { %v418_v61 = vsel %vm417_vm8, 1, %v1373_v2  ;;  %v432_v6 = vshrl.u32 %v428_v37, 16  ;;  %v434_v7 = vshrl.u32 %v429_v39, 16  ;;  %v1525_v11 = vadd.s32 %v437_v58, %v433_v54 }
  0x97   :  { %v420_v0 = vadd.s32 %v418_v61, %v416_v60  ;;  %v442_v13 = vadd.s32 %v440_v1, %v438_v62  ;;  %v75_v15 = vor.u32 %v74_v4, %v73_v63  ;;  %vm76_vm10 = vcmp.lt.s32.totalorder %v1493_v21, 1 }
  0x98   :  { %vm79_vm11 = vcmp.lt.s32.totalorder %v1493_v21, 4  ;;  %vm78_vm12 = vcmp.lt.s32.totalorder %v1493_v21, 3  ;;  %v84_v34 = vsel %vm76_vm10, %v1495_v22, %v1499_v26  ;;  %vm77_vm13 = vcmp.lt.s32.totalorder %v1493_v21, 2 }
  0x99   :  { %v421_v14 = vadd.s32 %v420_v0, %v410_v47  ;;  %v443_v16 = vadd.s32 %v442_v13, %v432_v6  ;;  %v85_v17 = vsel %vm79_vm11, %v72_v3, 920167782  ;;  %v88_v25 = vsel %vm76_vm10, %v1499_v26, %v1511_v55 }
  0x9a   :  { %v86_v23 = vsel %vm78_vm12, %v1511_v55, %v85_v17  ;;  %v391_v28 = vsel %vm385_vm3, %v388_v19, %v390_v20  ;;  %v89_v39 = vsel %vm79_vm11, %v75_v15, 1326507024  ;;  %v94_v41 = vshrl.u32 %v1433_v27, 16 }
  0x9b   :  { %v1536_v18 = vadd.s32 %v421_v14, %v412_v50  ;;  %v444_v31 = vadd.s32 %v443_v16, %v434_v7  ;;  %v87_v37 = vsel %vm77_vm13, %v84_v34, %v86_v23  ;;  %v90_v29 = vsel %vm78_vm12, %v72_v3, %v89_v39 }
  0x9c   :  { %v117_v43 = vand.u32 65535, %v87_v37  ;;  %v91_v35 = vsel %vm77_vm13, %v88_v25, %v90_v29  ;;  %v118_v19 = vshrl.u32 %v87_v37, 16  ;;  %v509_v20 = vand.u32 2139095040, %v1436_v30 }
  0x9d   :  { %vm447_vm14 = vc.u32 %v1536_v18, %v1525_v11  ;;  %v448_v44 = vadd.s32 1, %v444_v31  ;;  %v445_v46 = vmul.u32 %v1431_v24, %v391_v28  ;;  %v95_v47 = vand.u32 65535, %v91_v35 }
  0x9e   :  { %v96_v49 = vshrl.u32 %v91_v35, 16  ;;  %v120_v52 = vmul.u32 %v118_v19, %v1451_v40  ;;  %v121_v53 = vmul.u32 %v117_v43, %v94_v41  ;;  %v119_v59 = vmul.u32 %v117_v43, %v1451_v40 }
  0x9f   :  { %v449_v50 = vsel %vm447_vm14, %v448_v44, %v444_v31  ;;  %v99_v58 = vmul.u32 %v95_v47, %v94_v41  ;;  %v122_v60 = vmul.u32 %v118_v19, %v94_v41  ;;  %v510_v33 = vshrl.u32 %v509_v20, 23 }
  0xa0   :  { %v450_v54 = vadd.s32 %v449_v50, %v445_v46  ;;  %v98_v57 = vmul.u32 %v96_v49, %v1451_v40  ;;  %v123_v32 = vshll.u32 %v120_v52, 16  ;;  %v97_v62 = vmul.u32 %v95_v47, %v1451_v40 }
  0xa1   :  { %v100_v63 = vmul.u32 %v96_v49, %v94_v41  ;;  %v103_v0 = vshll.u32 %v99_v58, 16  ;;  %v125_v1 = vshll.u32 %v121_v53, 16  ;;  %v60_v13 = vshrl.u32 %v1374_v36, %v1462_v56 }
  0xa2   :  { %v451_v61 = vadd.s32 536870912, %v450_v54  ;;  %v101_v24 = vshll.u32 %v98_v57, 16  ;;  %vm127_vm15 = vc.u32 %v119_v59, %v123_v32  ;;  %v129_v3 = vadd.s32 %v123_v32, %v119_v59 }
  0xa3   :  { %v128_v7 = vsel %vm127_vm15, 1, %v1373_v2  ;;  %v81_v40 = vsel %vm79_vm11, %v1511_v55, 2102212464  ;;  %v506_v25 = vand.u32 2147483647, %v1436_v30  ;;  %v1319_v28 = vadd.s32 4294967169, %v510_v33 }
  0xa4   :  { %v452_v4 = vshrl.u32 %v451_v61, 30  ;;  %vm105_vm0 = vc.u32 %v97_v62, %v101_v24  ;;  %v107_v6 = vadd.s32 %v101_v24, %v97_v62  ;;  %v130_v15 = vadd.s32 %v128_v7, %v122_v60 }
  0xa5   :  { %v106_v14 = vsel %vm105_vm0, 1, %v1373_v2  ;;  %vm131_vm1 = vc.u32 %v129_v3, %v125_v1  ;;  %v80_v56 = vsel %vm76_vm10, %v60_v13, %v1495_v22  ;;  %v82_v55 = vsel %vm78_vm12, %v1499_v26, %v81_v40 }
  0xa6   :  { %v453_v16 = vshll.u32 %v452_v4, 30  ;;  %v108_v34 = vadd.s32 %v106_v14, %v100_v63  ;;  %vm109_vm2 = vc.u32 %v107_v6, %v103_v0  ;;  %v132_v23 = vsel %vm131_vm1, 1, %v1373_v2 }
  0xa7   :  { %v110_v17 = vsel %vm109_vm2, 1, %v1373_v2  ;;  %v134_v39 = vadd.s32 %v132_v23, %v130_v15  ;;  %v102_v29 = vshrl.u32 %v98_v57, 16  ;;  %v124_v41 = vshrl.u32 %v120_v52, 16 }
  0xa8   :  { %v454_v31 = vsub.s32 %v450_v54, %v453_v16  ;;  %v112_v37 = vadd.s32 %v110_v17, %v108_v34  ;;  %v516_v43 = vadd.s32 1, %v1319_v28  ;;  %v476_v35 = vsub.s32 4, %v452_v4 }
  0xa9   :  { %v104_v19 = vshrl.u32 %v99_v58, 16  ;;  %v126_v46 = vshrl.u32 %v121_v53, 16  ;;  %v135_v47 = vadd.s32 %v134_v39, %v124_v41  ;;  %v1280_v49 = vlaneseq }
  0xaa   :  { %vm455_vm3 = vcmp.lt.s32.totalorder %v454_v31, 0  ;;  %v456_v44 = vsub.s32 0, %v454_v31  ;;  %v113_v20 = vadd.s32 %v112_v37, %v102_v29  ;;  %vm517_vm4 = vcmp.gt.s32.totalorder %v516_v43, 0 }
  0xab   :  { %vm354_vm5 = vcmp.lt.s32.totalorder %v1418_v8, 0  ;;  %v83_v54 = vsel %vm77_vm13, %v80_v56, %v82_v55  ;;  %v136_v52 = vadd.s32 %v135_v47, %v126_v46  ;;  %v1588_v59 = vadd.s32 %v129_v3, %v125_v1 }
  0xac   :  { %v457_v22 = vsel %vm455_vm3, %v456_v44, %v454_v31  ;;  %v1584_v26 = vadd.s32 %v113_v20, %v104_v19  ;;  %v477_v57 = vsel %vm354_vm5, %v476_v35, %v452_v4  ;;  %v513_v53 = vand.u32 8388607, %v506_v25 }
  0xad   :  { %v458_v50 = vclz %v457_v22  ;;  %v518_v58 = vsel %vm517_vm4, %v516_v43, 0  ;;  %vm1594_vm6 = vcmp.le.f32.partialorder %v352_v10, 0.7853982  ;;  %v140_v21 = vadd.s32 1, %v136_v52 }
  0xae   :  { %vm139_vm7 = vc.u32 %v1584_v26, %v1588_v59  ;;  %v479_v33 = vsel %vm1594_vm6, 0, %v477_v57  ;;  %v137_v61 = vmul.u32 %v1433_v27, %v83_v54  ;;  %v520_v62 = vand.u32 31, %v518_v58  ;;  %v25_v54 = vpop.permute.xlu0 %24 }
  0xaf   :  { %v1317_v60 = vadd.s32 4294967294, %v458_v50  ;;  %v1603_v63 = vand.u32 127, %v1280_v49  ;;  %v141_v0 = vsel %vm139_vm7, %v140_v21, %v136_v52  ;;  %v514_v1 = vor.u32 8388608, %v513_v53 }
  0xb0   :  { %v446_v10 = vadd.s32 %v1525_v11, %v1536_v18  ;;  %v142_v6 = vadd.s32 %v141_v0, %v137_v61  ;;  %v1114_v7 = vadd.s32 3, %v479_v33  ;;  %v521_v13 = vsub.s32 32, %v520_v62 }
  0xb1   :  { %vm1318_vm8 = vcmp.lt.s32.totalorder %v1317_v60, 0  ;;  %v1282_v27 = vand.u32 1, %v1603_v63  ;;  %v1608_v34 = vand.u32 3, %v479_v33  ;;  %v1610_v17 = vshrl.u32 %v518_v58, 5 }
  0xb2   :  { %v461_v24 = vsel %vm1318_vm8, 0, %v1317_v60  ;;  %v143_v40 = vadd.s32 536870912, %v142_v6  ;;  %v1612_v23 = vshll.u32 %v514_v1, 8  ;;  %v533_v18 = vshrl.u32 %v1378_v48, %v521_v13 }
  0xb3   :  { %v462_v3 = vsub.s32 32, %v461_v24  ;;  %v466_v4 = vsub.s32 4294967266, %v461_v24  ;;  %v463_v14 = vshll.u32 %v454_v31, %v461_v24  ;;  %v524_v37 = vshrl.u32 %v1375_v38, %v521_v13 }
  0xb4   :  { %v144_v11 = vshrl.u32 %v143_v40, 30  ;;  %v527_v31 = vshrl.u32 %v1376_v42, %v521_v13  ;;  %v530_v39 = vshrl.u32 %v1377_v45, %v521_v13  ;;  %v532_v55 = vshll.u32 %v1377_v45, %v520_v62 }
  0xb5   :  { %v464_v15 = vshrl.u32 %v446_v10, %v462_v3  ;;  %v467_v16 = vadd.s32 127, %v466_v4  ;;  %v1619_v41 = vand.u32 3, %v1114_v7  ;;  %v523_v44 = vshll.u32 %v1374_v36, %v520_v62 }
  0xb6   :  { %v145_v43 = vshll.u32 %v144_v11, 30  ;;  %vm46_vm9 = vcmp.lt.s32.totalorder %v1421_v9, 0  ;;  %v526_v35 = vshll.u32 %v1375_v38, %v520_v62  ;;  %v529_v19 = vshll.u32 %v1376_v42, %v520_v62 }
  0xb7   :  { %v465_v28 = vor.u32 %v464_v15, %v463_v14  ;;  %v468_v56 = vshll.u32 %v467_v16, 23  ;;  %v534_v20 = vor.u32 %v533_v18, %v532_v55  ;;  %v536_v46 = vshrl.u32 %v1379_v51, %v521_v13 }
  0xb8   :  { %v146_v22 = vsub.s32 %v142_v6, %v145_v43  ;;  %v535_v50 = vshll.u32 %v1378_v48, %v520_v62  ;;  %v525_v52 = vor.u32 %v524_v37, %v523_v44  ;;  %v528_v57 = vor.u32 %v527_v31, %v526_v35 }
  0xb9   :  { %v469_v29 = vor.u32 4788187, %v468_v56  ;;  %v472_v49 = vcvt.s32.f32 %v465_v28  ;;  %v531_v53 = vor.u32 %v530_v39, %v529_v19  ;;  %vm541_vm10 = vcmp.lt.s32.totalorder %v1610_v17, 4 }
  0xba   :  { %vm147_vm11 = vcmp.lt.s32.totalorder %v146_v22, 0  ;;  %v148_v60 = vsub.s32 0, %v146_v22  ;;  %v537_v21 = vor.u32 %v536_v46, %v535_v50  ;;  %v547_v33 = vsel %vm541_vm10, %v534_v20, 920167782 }
  0xbb   :  { %v470_v47 = vand.u32 2147483647, %v469_v29  ;;  %v1631_v61 = vand.u32 65535, %v1612_v23  ;;  %v1634_v24 = vshrl.u32 %v1612_v23, 16  ;;  %v1637_v62 = vmul.f32 %v1415_v5, %v25_v54 }
  0xbc   :  { %v149_v1 = vsel %vm147_vm11, %v148_v60, %v146_v22  ;;  %v168_v10 = vsub.s32 4, %v144_v11  ;;  %vm538_vm12 = vcmp.lt.s32.totalorder %v1610_v17, 1  ;;  %v138_v3 = vadd.s32 %v1588_v59, %v1584_v26 }
  0xbd   :  { %v473_v58 = vmul.f32 %v472_v49, %v470_v47  ;;  %v150_v4 = vclz %v149_v1  ;;  %vm540_vm13 = vcmp.lt.s32.totalorder %v1610_v17, 3  ;;  %v546_v6 = vsel %vm538_vm12, %v525_v52, %v528_v57 }
  0xbe   :  { %v548_v5 = vsel %vm540_vm13, %v531_v53, %v547_v33  ;;  %v550_v14 = vsel %vm538_vm12, %v528_v57, %v531_v53  ;;  %v551_v15 = vsel %vm541_vm10, %v537_v21, 1326507024  ;;  %v522_v16 = vshrl.u32 %v1374_v36, %v521_v13 }
  0xbf   :  { %v474_v0 = vxor.u32 2147483648, %v473_v58  ;;  %v1311_v59 = vadd.s32 4294967294, %v150_v4  ;;  %vm539_vm14 = vcmp.lt.s32.totalorder %v1610_v17, 2  ;;  %v1664_v28 = vsel %vm46_vm9, %v168_v10, %v144_v11 }
  0xc0   :  { %v1668_v56 = vsel %vm539_vm14, %v546_v6, %v548_v5  ;;  %v552_v32 = vsel %vm540_vm13, %v534_v20, %v551_v15  ;;  %v1674_v13 = vsel %vm538_vm12, %v522_v16, %v525_v52  ;;  %v543_v18 = vsel %vm541_vm10, %v531_v53, 2102212464 }
  0xc1   :  { %v475_v7 = vsel %vm354_vm5, %v474_v0, %v473_v58  ;;  %vm1312_vm15 = vcmp.lt.s32.totalorder %v1311_v59, 0  ;;  %v553_v37 = vsel %vm539_vm14, %v550_v14, %v552_v32  ;;  %v579_v35 = vand.u32 65535, %v1668_v56 }
  0xc2   :  { %v1656_v26 = vsel %vm1594_vm6, %v1418_v8, %v475_v7  ;;  %v153_v39 = vsel %vm1312_vm15, 0, %v1311_v59  ;;  %v557_v55 = vand.u32 65535, %v553_v37  ;;  %v558_v44 = vshrl.u32 %v553_v37, 16 }
  0xc3   :  { %v480_v40 = vmul.f32 %v1656_v26, %v1656_v26  ;;  %v154_v29 = vsub.s32 32, %v153_v39  ;;  %v158_v43 = vsub.s32 4294967266, %v153_v39  ;;  %v580_v47 = vshrl.u32 %v1668_v56, 16 }
  0xc4   :  { %v1682_v46 = vmul.u32 %v557_v55, %v1634_v24  ;;  %v155_v49 = vshll.u32 %v146_v22, %v153_v39  ;;  %v560_v52 = vmul.u32 %v558_v44, %v1631_v61  ;;  %v1688_v60 = vsel %vm540_vm13, %v528_v57, %v543_v18 }
  0xc5   :  { %v481_v11 = vmul.f32 -0.001358992, %v480_v40  ;;  %v488_v31 = vmul.f32 -0.00019511016, %v480_v40  ;;  %v156_v50 = vshrl.u32 %v138_v3, %v154_v29  ;;  %v159_v54 = vadd.s32 127, %v158_v43 }
  0xc6   :  { %v559_v21 = vmul.u32 %v557_v55, %v1631_v61  ;;  %v562_v1 = vmul.u32 %v558_v44, %v1634_v24  ;;  %v563_v10 = vshll.u32 %v560_v52, 16  ;;  %vm501_vm0 = vcmp.eq.s32.totalorder %v1608_v34, 2 }
  0xc7   :  { %v482_v19 = vadd.f32 0.041655596, %v481_v11  ;;  %v489_v20 = vadd.f32 0.008332121, %v488_v31  ;;  %v157_v33 = vor.u32 %v156_v50, %v155_v49  ;;  %v160_v0 = vshll.u32 %v159_v54, 23 }
  0xc8   :  { %vm1120_vm1 = vcmp.eq.s32.totalorder %v1619_v41, 2  ;;  %v565_v22 = vshll.u32 %v1682_v46, 16  ;;  %v582_v3 = vmul.u32 %v580_v47, %v1631_v61  ;;  %vm498_vm2 = vcmp.eq.s32.totalorder %v1608_v34, 0 }
  0xc9   :  { %v483_v53 = vmul.f32 %v482_v19, %v480_v40  ;;  %v490_v58 = vmul.f32 %v489_v20, %v480_v40  ;;  %vm1117_vm3 = vcmp.eq.s32.totalorder %v1619_v41, 0  ;;  %vm1700_vm4 = vcmp.le.f32.partialorder %v44_v12, 0.7853982 }
  0xca   :  { %v161_v7 = vor.u32 4788187, %v160_v0  ;;  %vm567_vm5 = vc.u32 %v559_v21, %v563_v10  ;;  %v569_v5 = vadd.s32 %v563_v10, %v559_v21  ;;  %v581_v14 = vmul.u32 %v579_v35, %v1631_v61 }
  0xcb   :  { %v484_v4 = vadd.f32 -0.4999988, %v483_v53  ;;  %v491_v6 = vadd.f32 -0.16666654, %v490_v58  ;;  %vm1707_vm6 = vcmp.eq.s32.totalorder %v1282_v27, 1  ;;  %vm497_vm7 = vcmp.lt.s32.totalorder %v1608_v34, 2 }
  0xcc   :  { %vm1116_vm8 = vcmp.lt.s32.totalorder %v1619_v41, 2  ;;  %v164_v12 = vcvt.s32.f32 %v157_v33  ;;  %v568_v56 = vsel %vm567_vm5, 1, %v1373_v2  ;;  %vm495_vm10 = vweird.f32 %v1418_v8 }
  0xcd   :  { %v485_v59 = vmul.f32 %v484_v4, %v480_v40  ;;  %v492_v16 = vmul.f32 %v491_v6, %v480_v40  ;;  %v162_v32 = vand.u32 2147483647, %v161_v7  ;;  %v570_v18 = vadd.s32 %v568_v56, %v562_v1 }
  0xce   :  { %vm571_vm11 = vc.u32 %v569_v5, %v565_v22  ;;  %v583_v63 = vmul.u32 %v579_v35, %v1634_v24  ;;  %v585_v11 = vshll.u32 %v582_v3, 16  ;;  %v564_v31 = vshrl.u32 %v560_v52, 16 }
  0xcf   :  { %v486_v27 = vadd.f32 1.0, %v485_v59  ;;  %v493_v61 = vadd.f32 1.0, %v492_v16  ;;  %v572_v37 = vsel %vm571_vm11, 1, %v1373_v2  ;;  %v165_v40 = vmul.f32 %v164_v12, %v162_v32 }
  0xd0   :  { %v566_v39 = vshrl.u32 %v1682_v46, 16  ;;  %v574_v55 = vadd.s32 %v572_v37, %v570_v18  ;;  %v584_v44 = vmul.u32 %v580_v47, %v1634_v24  ;;  %vm589_vm12 = vc.u32 %v581_v14, %v585_v11 }
  0xd1   :  { %v494_v29 = vmul.f32 %v493_v61, %v1656_v26  ;;  %v502_v43 = vxor.u32 2147483648, %v486_v27  ;;  %v166_v19 = vxor.u32 2147483648, %v165_v40  ;;  %v587_v20 = vshll.u32 %v583_v63, 16 }
  0xd2   :  { %v590_v35 = vsel %vm589_vm12, 1, %v1373_v2  ;;  %v591_v49 = vadd.s32 %v585_v11, %v581_v14  ;;  %v575_v54 = vadd.s32 %v574_v55, %v564_v31  ;;  %v586_v53 = vshrl.u32 %v582_v3, 16 }
  0xd3   :  { %v499_v50 = vxor.u32 2147483648, %v494_v29  ;;  %v592_v58 = vadd.s32 %v590_v35, %v584_v44  ;;  %v503_v52 = vsel %vm501_vm0, %v502_v43, %v494_v29  ;;  %v1122_v46 = vsel %vm1120_vm1, %v502_v43, %v494_v29 }
  0xd4   :  { %v167_v26 = vsel %vm46_vm9, %v166_v19, %v165_v40  ;;  %vm593_vm13 = vc.u32 %v591_v49, %v587_v20  ;;  %v1743_v3 = vadd.s32 %v575_v54, %v566_v39  ;;  %v588_v7 = vshrl.u32 %v583_v63, 16 }
  0xd5   :  { %v500_v24 = vsel %vm498_vm2, %v486_v27, %v499_v50  ;;  %v1119_v47 = vsel %vm1117_vm3, %v486_v27, %v499_v50  ;;  %v170_v21 = vsel %vm1700_vm4, %v1421_v9, %v167_v26  ;;  %v594_v33 = vsel %vm593_vm13, 1, %v1373_v2 }
  0xd6   :  { %v504_v0 = vsel %vm497_vm7, %v500_v24, %v503_v52  ;;  %v1123_v1 = vsel %vm1116_vm8, %v1119_v47, %v1122_v46  ;;  %v172_v10 = vmul.f32 %v170_v21, %v170_v21  ;;  %v596_v4 = vadd.s32 %v594_v33, %v592_v58 }
  0xd7   :  { %v505_v6 = vsel %vm495_vm10, nan, %v504_v0  ;;  %v1124_v22 = vsel %vm495_vm10, nan, %v1123_v1  ;;  %v1747_v41 = vadd.s32 %v591_v49, %v587_v20  ;;  %v201_v16 = vand.u32 2139095040, %v1637_v62 }
  0xd8   :  { %v1286_v5 = vsel %vm1707_vm6, %v1124_v22, %v505_v6  ;;  %v173_v14 = vmul.f32 -0.001358992, %v172_v10  ;;  %v180_v34 = vmul.f32 -0.00019511016, %v172_v10  ;;  %v597_v59 = vadd.s32 %v596_v4, %v586_v53 }
  0xd9   :  { %1290 = vst [vmem:[#allocation2 + $0x10] sm:$0xff] %v1286_v5  ;;  %v545_v8 = vsel %vm539_vm14, %v1674_v13, %v1688_v60  ;;  %v171_v18 = vsel %vm1700_vm4, 0, %v1664_v28  ;;  %vm601_vm9 = vc.u32 %v1743_v3, %v1747_v41  ;;  %v202_v63 = vshrl.u32 %v201_v16, 23 }
  0xda   :  { %v174_v12 = vadd.f32 0.041655596, %v173_v14  ;;  %v181_v56 = vadd.f32 0.008332121, %v180_v34  ;;  %v598_v32 = vadd.s32 %v597_v59, %v588_v7  ;;  %v599_v11 = vmul.u32 %v1612_v23, %v545_v8 }
  0xdb   :  { %v1313_v40 = vadd.s32 4294967169, %v202_v63  ;;  %v804_v55 = vadd.s32 3, %v171_v18  ;;  %v188_v57 = vand.u32 3, %v171_v18  ;;  %v198_v23 = vand.u32 2147483647, %v1637_v62 }
  0xdc   :  { %v175_v27 = vmul.f32 %v174_v12, %v172_v10  ;;  %v182_v61 = vmul.f32 %v181_v56, %v172_v10  ;;  %v602_v37 = vadd.s32 1, %v598_v32  ;;  %vm187_vm15 = vweird.f32 %v1421_v9 }
  0xdd   :  { %v208_v60 = vadd.s32 1, %v1313_v40  ;;  %v805_v20 = vand.u32 3, %v804_v55  ;;  %vm189_vm0 = vcmp.lt.s32.totalorder %v188_v57, 2  ;;  %vm190_vm1 = vcmp.eq.s32.totalorder %v188_v57, 0 }
  0xde   :  { %v176_v31 = vadd.f32 -0.4999988, %v175_v27  ;;  %v183_v39 = vadd.f32 -0.16666654, %v182_v61  ;;  %v603_v17 = vsel %vm601_vm9, %v602_v37, %v598_v32  ;;  %vm193_vm2 = vcmp.eq.s32.totalorder %v188_v57, 2 }
  0xdf   :  { %v604_v13 = vadd.s32 %v603_v17, %v599_v11  ;;  %vm209_vm14 = vcmp.gt.s32.totalorder %v208_v60, 0  ;;  %vm806_vm3 = vcmp.lt.s32.totalorder %v805_v20, 2  ;;  %vm807_vm4 = vcmp.eq.s32.totalorder %v805_v20, 0 }
  0xe0   :  { %v177_v29 = vmul.f32 %v176_v31, %v172_v10  ;;  %v184_v43 = vmul.f32 %v183_v39, %v172_v10  ;;  %v210_v35 = vsel %vm209_vm14, %v208_v60, 0  ;;  %vm810_vm5 = vcmp.eq.s32.totalorder %v805_v20, 2 }
  0xe1   :  { %v605_v28 = vadd.s32 536870912, %v604_v13  ;;  %v212_v50 = vand.u32 31, %v210_v35  ;;  %v205_v26 = vand.u32 8388607, %v198_v23  ;;  %v1779_v12 = vshrl.u32 %v210_v35, 5 }
  0xe2   :  { %v178_v44 = vadd.f32 1.0, %v177_v29  ;;  %v185_v19 = vadd.f32 1.0, %v184_v43  ;;  %vm1824_vm9 = vcmp.le.f32.partialorder %v506_v25, 0.7853982  ;;  %vm508_vm14 = vcmp.lt.s32.totalorder %v1436_v30, 0 }
  0xe3   :  { %v1760_v49 = vshrl.u32 %v605_v28, 30  ;;  %v1767_v24 = vsub.s32 32, %v212_v50  ;;  %v206_v16 = vor.u32 8388608, %v205_v26  ;;  %v215_v56 = vshll.u32 %v1374_v36, %v212_v50 }
  0xe4   :  { %v186_v54 = vmul.f32 %v185_v19, %v170_v21  ;;  %v194_v53 = vxor.u32 2147483648, %v178_v44  ;;  %v218_v9 = vshll.u32 %v1375_v38, %v212_v50  ;;  %v221_v8 = vshll.u32 %v1376_v42, %v212_v50 }
  0xe5   :  { %v607_v58 = vshll.u32 %v1760_v49, 30  ;;  %v216_v14 = vshrl.u32 %v1375_v38, %v1767_v24  ;;  %v219_v34 = vshrl.u32 %v1376_v42, %v1767_v24  ;;  %v222_v32 = vshrl.u32 %v1377_v45, %v1767_v24 }
  0xe6   :  { %v191_v52 = vxor.u32 2147483648, %v186_v54  ;;  %v195_v21 = vsel %vm193_vm2, %v194_v53, %v186_v54  ;;  %v812_v0 = vsel %vm810_vm5, %v194_v53, %v186_v54  ;;  %v224_v63 = vshll.u32 %v1377_v45, %v212_v50 }
  0xe7   :  { %v608_v46 = vsub.s32 %v604_v13, %v607_v58  ;;  %v225_v27 = vshrl.u32 %v1378_v48, %v1767_v24  ;;  %v228_v61 = vshrl.u32 %v1379_v51, %v1767_v24  ;;  %v217_v37 = vor.u32 %v216_v14, %v215_v56 }
  0xe8   :  { %v192_v47 = vsel %vm190_vm1, %v178_v44, %v191_v52  ;;  %v809_v33 = vsel %vm807_vm4, %v178_v44, %v191_v52  ;;  %v1791_v11 = vor.u32 %v219_v34, %v218_v9  ;;  %v227_v40 = vshll.u32 %v1378_v48, %v212_v50 }
  0xe9   :  { %v196_v1 = vsel %vm189_vm0, %v192_v47, %v195_v21  ;;  %v813_v10 = vsel %vm806_vm3, %v809_v33, %v812_v0  ;;  %vm609_vm7 = vcmp.lt.s32.totalorder %v608_v46, 0  ;;  %v610_v4 = vsub.s32 0, %v608_v46 }
  0xea   :  { %v197_v6 = vsel %vm187_vm15, nan, %v196_v1  ;;  %v814_v22 = vsel %vm187_vm15, nan, %v813_v10  ;;  %v600_v38 = vadd.s32 %v1747_v41, %v1743_v3  ;;  %v223_v42 = vor.u32 %v222_v32, %v221_v8 }
  0xeb   :  { %v1284_v7 = vsel %vm1707_vm6, %v814_v22, %v197_v6  ;;  %v611_v5 = vsel %vm609_vm7, %v610_v4, %v608_v46  ;;  %v226_v31 = vor.u32 %v225_v27, %v224_v63  ;;  %v229_v55 = vor.u32 %v228_v61, %v227_v40 }
  0xec   :  { %1288 = vst [vmem:[#allocation2] sm:$0xff] %v1284_v7  ;;  %v612_v59 = vclz %v611_v5  ;;  %vm230_vm10 = vcmp.lt.s32.totalorder %v1779_v12, 1  ;;  %v1797_v45 = vshll.u32 %v206_v16, 8  ;;  %vm231_vm11 = vcmp.lt.s32.totalorder %v1779_v12, 2 }
  0xed   :  { %vm233_vm12 = vcmp.lt.s32.totalorder %v1779_v12, 4  ;;  %vm232_vm13 = vcmp.lt.s32.totalorder %v1779_v12, 3  ;;  %v238_v48 = vsel %vm230_vm10, %v217_v37, %v1791_v11  ;;  %v242_v43 = vsel %vm230_vm10, %v1791_v11, %v223_v42 }
  0xee   :  { %v1320_v18 = vadd.s32 4294967294, %v612_v59  ;;  %v239_v3 = vsel %vm233_vm12, %v226_v31, 920167782  ;;  %v243_v28 = vsel %vm233_vm12, %v229_v55, 1326507024  ;;  %v247_v54 = vand.u32 65535, %v1797_v45 }
  0xef   :  { %v240_v29 = vsel %vm232_vm13, %v223_v42, %v239_v3  ;;  %v244_v20 = vsel %vm232_vm13, %v226_v31, %v243_v28  ;;  %v248_v53 = vshrl.u32 %v1797_v45, 16  ;;  %v630_v21 = vsub.s32 4, %v1760_v49 }
  0xf0   :  { %vm1321_vm8 = vcmp.lt.s32.totalorder %v1320_v18, 0  ;;  %v241_v57 = vsel %vm231_vm11, %v238_v48, %v240_v29  ;;  %v245_v50 = vsel %vm231_vm11, %v242_v43, %v244_v20  ;;  %v214_v33 = vshrl.u32 %v1374_v36, %v1767_v24 }
  0xf1   :  { %v615_v39 = vsel %vm1321_vm8, 0, %v1320_v18  ;;  %v271_v35 = vand.u32 65535, %v241_v57  ;;  %v272_v58 = vshrl.u32 %v241_v57, 16  ;;  %v249_v26 = vand.u32 65535, %v245_v50 }
  0xf2   :  { %v616_v17 = vsub.s32 32, %v615_v39  ;;  %v620_v13 = vsub.s32 4294967266, %v615_v39  ;;  %v617_v51 = vshll.u32 %v608_v46, %v615_v39  ;;  %v250_v47 = vshrl.u32 %v245_v50, 16 }
  0xf3   :  { %v274_v0 = vmul.u32 %v272_v58, %v247_v54  ;;  %v275_v1 = vmul.u32 %v271_v35, %v248_v53  ;;  %v253_v22 = vmul.u32 %v249_v26, %v248_v53  ;;  %v234_v25 = vsel %vm230_vm10, %v214_v33, %v217_v37 }
  0xf4   :  { %v618_v41 = vshrl.u32 %v600_v38, %v616_v17  ;;  %v621_v60 = vadd.s32 127, %v620_v13  ;;  %v252_v6 = vmul.u32 %v250_v47, %v247_v54  ;;  %v273_v7 = vmul.u32 %v271_v35, %v247_v54 }
  0xf5   :  { %v276_v5 = vmul.u32 %v272_v58, %v248_v53  ;;  %v277_v14 = vshll.u32 %v274_v0, 16  ;;  %v251_v59 = vmul.u32 %v249_v26, %v247_v54  ;;  %v254_v16 = vmul.u32 %v250_v47, %v248_v53 }
  0xf6   :  { %v619_v44 = vor.u32 %v618_v41, %v617_v51  ;;  %v622_v19 = vshll.u32 %v621_v60, 23  ;;  %v255_v56 = vshll.u32 %v252_v6, 16  ;;  %v257_v9 = vshll.u32 %v253_v22, 16 }
  0xf7   :  { %v279_v8 = vshll.u32 %v275_v1, 16  ;;  %vm281_vm15 = vc.u32 %v273_v7, %v277_v14  ;;  %v283_v36 = vadd.s32 %v277_v14, %v273_v7  ;;  %v235_v63 = vsel %vm233_vm12, %v223_v42, 2102212464 }
  0xf8   :  { %v623_v46 = vor.u32 4788187, %v622_v19  ;;  %v626_v4 = vcvt.s32.f32 %v619_v44  ;;  %vm259_vm0 = vc.u32 %v251_v59, %v255_v56  ;;  %v261_v32 = vadd.s32 %v255_v56, %v251_v59 }
  0xf9   :  { %v282_v18 = vsel %vm281_vm15, 1, %v1373_v2  ;;  %v260_v27 = vsel %vm259_vm0, 1, %v1373_v2  ;;  %vm285_vm1 = vc.u32 %v283_v36, %v279_v8  ;;  %v278_v55 = vshrl.u32 %v274_v0, 16 }
  0xfa   :  { %v624_v10 = vand.u32 2147483647, %v623_v46  ;;  %v284_v61 = vadd.s32 %v282_v18, %v276_v5  ;;  %v262_v40 = vadd.s32 %v260_v27, %v254_v16  ;;  %vm263_vm2 = vc.u32 %v261_v32, %v257_v9 }
  0xfb   :  { %v286_v38 = vsel %vm285_vm1, 1, %v1373_v2  ;;  %v264_v39 = vsel %vm263_vm2, 1, %v1373_v2  ;;  %v236_v13 = vsel %vm232_vm13, %v1791_v11, %v235_v63  ;;  %v256_v51 = vshrl.u32 %v252_v6, 16 }
  0xfc   :  { %v627_v34 = vmul.f32 %v626_v4, %v624_v10  ;;  %v288_v17 = vadd.s32 %v286_v38, %v284_v61  ;;  %v266_v48 = vadd.s32 %v264_v39, %v262_v40  ;;  %v631_v3 = vsel %vm508_vm14, %v630_v21, %v1760_v49 }
  0xfd   :  { %v280_v41 = vshrl.u32 %v275_v1, 16  ;;  %v258_v57 = vshrl.u32 %v253_v22, 16  ;;  %v237_v2 = vsel %vm231_vm11, %v234_v25, %v236_v13  ;;  %v287_v11 = vadd.s32 %v283_v36, %v279_v8 }
  0xfe   :  { %v628_v24 = vxor.u32 2147483648, %v627_v34  ;;  %v289_v60 = vadd.s32 %v288_v17, %v278_v55  ;;  %v267_v28 = vadd.s32 %v266_v48, %v256_v51  ;;  %v633_v50 = vsel %vm1824_vm9, 0, %v631_v3 }
  0xff   :  { %v291_v58 = vmul.u32 %v1797_v45, %v237_v2  ;;  %v1269_v21 = vadd.s32 3, %v633_v50  ;;  %v650_v10 = vand.u32 3, %v633_v50  ;;  %vm649_vm13 = vweird.f32 %v1436_v30 }
 0x100   :  { %v629_v37 = vsel %vm508_vm14, %v628_v24, %v627_v34  ;;  %v290_v44 = vadd.s32 %v289_v60, %v280_v41  ;;  %v268_v35 = vadd.s32 %v267_v28, %v258_v57  ;;  %vm200_vm14 = vcmp.lt.s32.totalorder %v1637_v62, 0 }
 0x101   :  { %v632_v31 = vsel %vm1824_vm9, %v1436_v30, %v629_v37  ;;  %v1270_v22 = vand.u32 3, %v1269_v21  ;;  %vm651_vm4 = vcmp.lt.s32.totalorder %v650_v10, 2  ;;  %vm652_vm5 = vcmp.eq.s32.totalorder %v650_v10, 0 }
 0x102   :  { %v634_v42 = vmul.f32 %v632_v31, %v632_v31  ;;  %v294_v54 = vadd.s32 1, %v290_v44  ;;  %vm293_vm3 = vc.u32 %v268_v35, %v287_v11  ;;  %vm655_vm7 = vcmp.eq.s32.totalorder %v650_v10, 2 }
 0x103   :  { %vm1275_vm8 = vcmp.eq.s32.totalorder %v1270_v22, 2  ;;  %vm1271_vm10 = vcmp.lt.s32.totalorder %v1270_v22, 2  ;;  %vm1272_vm11 = vcmp.eq.s32.totalorder %v1270_v22, 0  ;;  %v292_v40 = vadd.s32 %v287_v11, %v268_v35 }
 0x104   :  { %v635_v29 = vmul.f32 -0.001358992, %v634_v42  ;;  %v642_v43 = vmul.f32 -0.00019511016, %v634_v42  ;;  %v295_v46 = vsel %vm293_vm3, %v294_v54, %v290_v44  ;;  %vm199_vm15 = vcmp.le.f32.partialorder %v198_v23, 0.7853982 }
 0x105   :  { %v296_v12 = vadd.s32 %v295_v46, %v291_v58 }
 0x106   :  { %v636_v19 = vadd.f32 0.041655596, %v635_v29  ;;  %v643_v20 = vadd.f32 0.008332121, %v642_v43 }
 0x107   :  { %v297_v1 = vadd.s32 536870912, %v296_v12 }
 0x108   :  { %v637_v53 = vmul.f32 %v636_v19, %v634_v42  ;;  %v644_v49 = vmul.f32 %v643_v20, %v634_v42 }
 0x109   :  { %v298_v52 = vshrl.u32 %v297_v1, 30 }
 0x10a   :  { %v638_v26 = vadd.f32 -0.4999988, %v637_v53  ;;  %v645_v47 = vadd.f32 -0.16666654, %v644_v49 }
 0x10b   :  { %v299_v5 = vshll.u32 %v298_v52, 30  ;;  %v322_v29 = vsub.s32 4, %v298_v52 }
 0x10c   :  { %v639_v33 = vmul.f32 %v638_v26, %v634_v42  ;;  %v646_v0 = vmul.f32 %v645_v47, %v634_v42 }
 0x10d   :  { %v300_v14 = vsub.s32 %v296_v12, %v299_v5  ;;  %v323_v44 = vsel %vm200_vm14, %v322_v29, %v298_v52 }
 0x10e   :  { %v640_v4 = vadd.f32 1.0, %v639_v33  ;;  %v647_v6 = vadd.f32 1.0, %v646_v0  ;;  %v325_v35 = vsel %vm199_vm15, 0, %v323_v44 }
 0x10f   :  { %vm301_vm12 = vcmp.lt.s32.totalorder %v300_v14, 0  ;;  %v302_v9 = vsub.s32 0, %v300_v14  ;;  %v959_v49 = vadd.s32 3, %v325_v35  ;;  %v342_v47 = vand.u32 3, %v325_v35 }
 0x110   :  { %v648_v25 = vmul.f32 %v647_v6, %v632_v31  ;;  %v656_v7 = vxor.u32 2147483648, %v640_v4 }
 0x111   :  { %v303_v18 = vsel %vm301_vm12, %v302_v9, %v300_v14  ;;  %v960_v21 = vand.u32 3, %v959_v49  ;;  %vm343_vm0 = vcmp.lt.s32.totalorder %v342_v47, 2  ;;  %vm344_vm1 = vcmp.eq.s32.totalorder %v342_v47, 0 }
 0x112   :  { %v653_v45 = vxor.u32 2147483648, %v648_v25  ;;  %v657_v34 = vsel %vm655_vm7, %v656_v7, %v648_v25  ;;  %v1277_v59 = vsel %vm1275_vm8, %v656_v7, %v648_v25  ;;  %v304_v27 = vclz %v303_v18 }
 0x113   :  { %vm347_vm2 = vcmp.eq.s32.totalorder %v342_v47, 2  ;;  %vm961_vm3 = vcmp.lt.s32.totalorder %v960_v21, 2  ;;  %vm341_vm7 = vweird.f32 %v1637_v62 }
 0x114   :  { %v654_v16 = vsel %vm652_vm5, %v640_v4, %v653_v45  ;;  %v1274_v56 = vsel %vm1272_vm11, %v640_v4, %v653_v45  ;;  %v1314_v61 = vadd.s32 4294967294, %v304_v27  ;;  %vm965_vm5 = vcmp.eq.s32.totalorder %v960_v21, 2 }
 0x115   :  { %v658_v8 = vsel %vm651_vm4, %v654_v16, %v657_v34  ;;  %v1278_v36 = vsel %vm1271_vm10, %v1274_v56, %v1277_v59  ;;  %vm962_vm4 = vcmp.eq.s32.totalorder %v960_v21, 0 }
 0x116   :  { %v659_v24 = vsel %vm649_vm13, nan, %v658_v8  ;;  %v1279_v32 = vsel %vm649_vm13, nan, %v1278_v36  ;;  %vm1315_vm9 = vcmp.lt.s32.totalorder %v1314_v61, 0 }
 0x117   :  { %v1287_v63 = vsel %vm1707_vm6, %v1279_v32, %v659_v24  ;;  %v307_v37 = vsel %vm1315_vm9, 0, %v1314_v61 }
 0x118   :  { %1291 = vst [vmem:[#allocation2 + $0x18] sm:$0xff] %v1287_v63  ;;  %v308_v38 = vsub.s32 32, %v307_v37  ;;  %v312_v31 = vsub.s32 4294967266, %v307_v37  ;;  %v309_v39 = vshll.u32 %v300_v14, %v307_v37 }
 0x11a   :  { %v310_v55 = vshrl.u32 %v292_v40, %v308_v38  ;;  %v313_v17 = vadd.s32 127, %v312_v31 }
 0x11c   :  { %v311_v30 = vor.u32 %v310_v55, %v309_v39  ;;  %v314_v42 = vshll.u32 %v313_v17, 23 }
 0x11e   :  { %v315_v13 = vor.u32 4788187, %v314_v42  ;;  %v318_v48 = vcvt.s32.f32 %v311_v30 }
 0x120   :  { %v316_v51 = vand.u32 2147483647, %v315_v13 }
 0x122   :  { %v319_v3 = vmul.f32 %v318_v48, %v316_v51 }
 0x124   :  { %v320_v41 = vxor.u32 2147483648, %v319_v3 }
 0x126   :  { %v321_v60 = vsel %vm200_vm14, %v320_v41, %v319_v3 }
 0x127   :  { %v324_v43 = vsel %vm199_vm15, %v1637_v62, %v321_v60 }
 0x128   :  { %v326_v57 = vmul.f32 %v324_v43, %v324_v43 }
 0x12a   :  { %v327_v28 = vmul.f32 -0.001358992, %v326_v57  ;;  %v334_v2 = vmul.f32 -0.00019511016, %v326_v57 }
 0x12c   :  { %v328_v19 = vadd.f32 0.041655596, %v327_v28  ;;  %v335_v20 = vadd.f32 0.008332121, %v334_v2 }
 0x12e   :  { %v329_v11 = vmul.f32 %v328_v19, %v326_v57  ;;  %v336_v50 = vmul.f32 %v335_v20, %v326_v57 }
 0x130   :  { %v330_v54 = vadd.f32 -0.4999988, %v329_v11  ;;  %v337_v53 = vadd.f32 -0.16666654, %v336_v50 }
 0x132   :  { %v331_v58 = vmul.f32 %v330_v54, %v326_v57  ;;  %v338_v46 = vmul.f32 %v337_v53, %v326_v57 }
 0x134   :  { %v332_v26 = vadd.f32 1.0, %v331_v58  ;;  %v339_v23 = vadd.f32 1.0, %v338_v46 }
 0x136   :  { %v340_v12 = vmul.f32 %v339_v23, %v324_v43  ;;  %v348_v33 = vxor.u32 2147483648, %v332_v26 }
 0x138   :  { %v345_v0 = vxor.u32 2147483648, %v340_v12  ;;  %v349_v10 = vsel %vm347_vm2, %v348_v33, %v340_v12  ;;  %v967_v6 = vsel %vm965_vm5, %v348_v33, %v340_v12 }
 0x13a   :  { %v346_v1 = vsel %vm344_vm1, %v332_v26, %v345_v0  ;;  %v964_v4 = vsel %vm962_vm4, %v332_v26, %v345_v0 }
 0x13b   :  { %v350_v22 = vsel %vm343_vm0, %v346_v1, %v349_v10  ;;  %v968_v52 = vsel %vm961_vm3, %v964_v4, %v967_v6 }
 0x13c   :  { %v351_v25 = vsel %vm341_vm7, nan, %v350_v22  ;;  %v969_v7 = vsel %vm341_vm7, nan, %v968_v52 }
 0x13d   :  { %v1285_v5 = vsel %vm1707_vm6, %v969_v7, %v351_v25 }
 0x13e   :  { %1289 = vst [vmem:[#allocation2 + $0x8] sm:$0xff] %v1285_v5 }
 0x13f   :  { %1304 = dma.vmem_to_hbm [thread:$0]  %s1297_s1, 512, %s1299_s21, [#allocation3], %s1381_s2, %s1381_s2, %s1382_s22  }
 0x140   :  { %1371 = dma.done.wait [#allocation3], 512  }
 0x141   :  { %1372 = vsyncadd [#allocation3], 4294966784 }
 0x142   :  { %1309 = vsyncpa [#allocation3], 1 }

</bundles_post_ra>
